<compile_context>
chip_gen: v5e
topology: v5e:2x2
jax: 0.10.0
libtpu: 0.0.40
codegen_flags: <defaults>
</compile_context>

<pallas_src>
import jax
import jax.numpy as jnp
from jax import lax
from jax.experimental import pallas as pl
from jax.experimental.pallas import tpu as pltpu


def _round_up(x, m):
    return (x + m - 1) // m * m


def _choose_tiles(n):
    n_pad = _round_up(max(int(n), 1), 128)
    tile_j = min(n_pad, 512)
    # Keep the (n_pad, tile_j) f32 mask tile under ~8 MiB (v7x's 64 MiB VMEM safe).
    while tile_j > 128 and tile_j * n_pad * 4 > (8 << 20):
        tile_j //= 2
    n_pad = _round_up(n_pad, tile_j)
    # TODO(synk): for very large N also tile the i (risk-set) dimension, or sort y
    # in the wrapper and use an O(N) suffix-cumsum formulation.
    return n_pad, tile_j


def _make_cox_kernel(n_real, n_pad, tile_j, n_weights, l2_reg):
    l2_reg = float(l2_reg)

    def kernel(*args):
        risk_ref, y_row_ref, y_col_ref, e_ref = args[:4]
        w_refs = args[4:4 + n_weights]
        out_ref = args[4 + n_weights]
        lhs_ref = args[5 + n_weights]   # VMEM (8, n_pad)
        sm_ref = args[6 + n_weights]    # SMEM (4,): [rmax, sum_e, acc, reg]

        step = pl.program_id(0)

        @pl.when(step == 0)
        def _init():
            risk = risk_ref[...]                                      # (1, n_pad)
            e_full = e_ref[...]                                       # (1, n_pad)
            lane = lax.broadcasted_iota(jnp.int32, (1, n_pad), 1)
            valid = (lane < n_real).astype(jnp.float32)               # (1, n_pad)

            rmax = jnp.max(jnp.where(valid > 0.5, risk, -jnp.inf))    # stable exp
            exp_row = jnp.exp(risk - rmax) * valid                    # (1, n_pad)

            lhs_ref[...] = jnp.zeros((8, n_pad), jnp.float32)
            lhs_ref[0:1, :] = exp_row
            lhs_ref[1:2, :] = valid

            sm_ref[0] = rmax
            sm_ref[1] = jnp.sum(e_full * valid)                       # sum(e)
            sm_ref[2] = jnp.float32(0.0)                              # accumulator

            reg = jnp.float32(0.0)
            for w_ref in w_refs:                                      # fused L2 reg
                w = w_ref[...].astype(jnp.float32)
                reg = reg + jnp.sqrt(jnp.sum(w * w))                  # torch.norm(w, p=2)
            sm_ref[3] = reg

        # ---------------- per j-tile work ----------------
        j0 = pl.multiple_of(step * tile_j, tile_j)
        r_tile = risk_ref[:, pl.ds(j0, tile_j)]                       # (1, tile_j)
        y_tile = y_row_ref[:, pl.ds(j0, tile_j)]                      # (1, tile_j)
        e_tile = e_ref[:, pl.ds(j0, tile_j)]                          # (1, tile_j)

        y_col = y_col_ref[...]                                        # (n_pad, 1)
        # mask[i, j] = 1  iff  y_i >= y_j   (j's risk set), broadcast compare on VPU.
        mask = (y_col >= y_tile).astype(jnp.float32)                  # (n_pad, tile_j)

        # One MXU matmul -> row 0: sum_i exp(r_i - rmax)*mask, row 1: sum_i mask.
        nd = jnp.dot(lhs_ref[...], mask, preferred_element_type=jnp.float32)  # (8, tile_j)
        num = nd[0:1, :]
        den = nd[1:2, :]

        rmax = sm_ref[0]
        log_loss = rmax + jnp.log(num) - jnp.log(den)                 # (1, tile_j)

        # Padded j columns have e == 0; the where-guard keeps any non-finite
        # values (and zero-event rows) out of the accumulator.
        contrib = jnp.where(e_tile > 0.0, (r_tile - log_loss) * e_tile, 0.0)
        sm_ref[2] = sm_ref[2] + jnp.sum(contrib)

        @pl.when(step == pl.num_programs(0) - 1)
        def _finalize():
            # NOTE: matches the PyTorch module -- no guard against sum(e) == 0.
            nll = -(sm_ref[2] / sm_ref[1])
            out_ref[0, 0] = nll + jnp.float32(l2_reg) * sm_ref[3]

    return kernel


def cox_nll_pallas(risk_pred, y, e, model_weights=(), l2_reg=0.0):
    n = int(risk_pred.shape[0])
    n_pad, tile_j = _choose_tiles(n)
    pad = n_pad - n

    def _row(v, fill):
        v = jnp.asarray(v, jnp.float32).reshape(1, n)
        return jnp.pad(v, ((0, 0), (0, pad)), constant_values=fill)

    risk_row = _row(risk_pred, 0.0)
    y_row = _row(y, -1e30)          # padded times sort below every real time
    e_row = _row(e, 0.0)            # padded samples contribute no events
    y_col = y_row.reshape(n_pad, 1)  # layout plumbing done wrapper-side

    weights_2d = []
    for w in model_weights:
        w2 = jnp.asarray(w, jnp.float32)
        if w2.ndim == 0:
            w2 = w2.reshape(1, 1)
        elif w2.ndim == 1:
            w2 = w2.reshape(1, -1)
        elif w2.ndim > 2:
            w2 = w2.reshape(w2.shape[0], -1)
        weights_2d.append(w2)
    n_w = len(weights_2d)

    kernel = _make_cox_kernel(n, n_pad, tile_j, n_w, l2_reg)

    in_specs = [
        pl.BlockSpec((1, n_pad), lambda j: (0, 0)),    # risk (lane-major)
        pl.BlockSpec((1, n_pad), lambda j: (0, 0)),    # y    (lane-major)
        pl.BlockSpec((n_pad, 1), lambda j: (0, 0)),    # y    (column copy for mask)
        pl.BlockSpec((1, n_pad), lambda j: (0, 0)),    # e    (lane-major)
    ] + [pl.BlockSpec(w.shape, lambda j: (0, 0)) for w in weights_2d]

    grid = (n_pad // tile_j,)

    vmem_est = 4 * (6 * tile_j * n_pad + 32 * n_pad) + (2 << 20)
    vmem_limit = int(min(max(vmem_est, 16 << 20), 64 << 20))

    out = pl.pallas_call(
        kernel,
        out_shape=jax.ShapeDtypeStruct((1, 1), jnp.float32),
        grid=grid,
        in_specs=in_specs,
        out_specs=pl.BlockSpec(memory_space=pltpu.MemorySpace.SMEM),
        scratch_shapes=[
            pltpu.VMEM((8, n_pad), jnp.float32),   # lhs rows: [exp*valid, valid, 0...]
            pltpu.SMEM((4,), jnp.float32),         # [rmax, sum_e, acc, reg]
        ],
        compiler_params=pltpu.CompilerParams(
            dimension_semantics=("arbitrary",),    # grid axis is a reduction
            vmem_limit_bytes=vmem_limit,
        ),
    )(risk_row, y_row, y_col, e_row, *weights_2d)
    return out[0, 0]


def negative_log_likelihood(risk_pred, y, e, model_weights, l2_reg):
    """Equivalent of NegativeLogLikelihood.forward(risk_pred, y, e, model)."""
    return cox_nll_pallas(risk_pred, y, e, model_weights, l2_reg)


def _reference(risk_pred, y, e, model_weights, l2_reg):
    mask = (y.T - y <= 0).astype(jnp.float32)                      # (N, N)
    log_loss = jnp.exp(risk_pred) * mask
    log_loss = jnp.sum(log_loss, axis=0) / jnp.sum(mask, axis=0)
    log_loss = jnp.log(log_loss).reshape(-1, 1)
    nll = -jnp.sum((risk_pred - log_loss) * e) / jnp.sum(e)
    reg = sum(jnp.sqrt(jnp.sum(jnp.asarray(w, jnp.float32) ** 2)) for w in model_weights)
    return nll + l2_reg * reg


if __name__ == "__main__":
    key = jax.random.PRNGKey(0)
    k1, k2, k3, k4, k5, k6, k7, k8 = jax.random.split(key, 8)

    # --- small case matching the module usage (batch of patients) ---
    N = 8
    IN, HID = 16, 32
    L2_REG = 1e-2   # config['l2_reg']

    risk_pred = jax.random.normal(k1, (N, 1), dtype=jnp.float32)          # risk scores
    y = jax.random.uniform(k2, (N, 1), dtype=jnp.float32) * 10.0          # survival times
    e = (jax.random.uniform(k3, (N, 1)) > 0.3).astype(jnp.float32)        # event indicators
    e = e.at[0, 0].set(1.0)                                               # ensure sum(e) > 0

    w1 = jax.random.normal(k4, (HID, IN), dtype=jnp.float32) * 0.1        # fc1.weight
    w2 = jax.random.normal(k5, (1, HID), dtype=jnp.float32) * 0.1         # fc2.weight
    model_weights = [w1, w2]

    loss = negative_log_likelihood(risk_pred, y, e, model_weights, L2_REG)
    loss = jax.block_until_ready(loss)
    ref = _reference(risk_pred, y, e, model_weights, L2_REG)
    assert jnp.allclose(loss, ref, rtol=1e-4, atol=1e-5), (loss, ref)

    # --- non-aligned size exercising padding + the multi-tile grid accumulation ---
    N2 = 600
    risk2 = jax.random.normal(k6, (N2, 1), dtype=jnp.float32)
    y2 = jax.random.uniform(k7, (N2, 1), dtype=jnp.float32) * 10.0
    e2 = (jax.random.uniform(k8, (N2, 1)) > 0.3).astype(jnp.float32)
    e2 = e2.at[0, 0].set(1.0)

    loss2 = negative_log_likelihood(risk2, y2, e2, model_weights, L2_REG)
    loss2 = jax.block_until_ready(loss2)
    ref2 = _reference(risk2, y2, e2, model_weights, L2_REG)
    assert jnp.allclose(loss2, ref2, rtol=2e-4, atol=1e-5), (loss2, ref2)

    print("KERNEL_OK")
</pallas_src>

<mosaic_0001>
module attributes {stable_mosaic.version = 11 : i64} {
  func.func @kernel(%arg0: i32, %arg1: memref<1x128xf32, #tpu.memory_space<vmem>>, %arg2: memref<1x128xf32, #tpu.memory_space<vmem>>, %arg3: memref<128x1xf32, #tpu.memory_space<vmem>>, %arg4: memref<1x128xf32, #tpu.memory_space<vmem>>, %arg5: memref<32x16xf32, #tpu.memory_space<vmem>>, %arg6: memref<1x32xf32, #tpu.memory_space<vmem>>, %arg7: memref<1x1xf32, #tpu.memory_space<smem>>, %arg8: memref<8x128xf32, #tpu.memory_space<vmem>>, %arg9: memref<4xf32, #tpu.memory_space<smem>>) attributes {dimension_semantics = [#tpu.dimension_semantics<arbitrary>], iteration_bounds = array<i64: 1>, scalar_prefetch = 0 : i64, scratch_operands = 2 : i64, tpu.core_type = #tpu.core_type<tc>, window_params = [{pipeline_mode = #tpu.pipeline_mode<synchronous>, transform_indices = @transform_0, window_bounds = array<i64: 1, 128>}, {pipeline_mode = #tpu.pipeline_mode<synchronous>, transform_indices = @transform_1, window_bounds = array<i64: 1, 128>}, {pipeline_mode = #tpu.pipeline_mode<synchronous>, transform_indices = @transform_2, window_bounds = array<i64: 128, 1>}, {pipeline_mode = #tpu.pipeline_mode<synchronous>, transform_indices = @transform_3, window_bounds = array<i64: 1, 128>}, {pipeline_mode = #tpu.pipeline_mode<synchronous>, transform_indices = @transform_4, window_bounds = array<i64: 32, 16>}, {pipeline_mode = #tpu.pipeline_mode<synchronous>, transform_indices = @transform_5, window_bounds = array<i64: 1, 32>}, {transform_indices = @transform_6, window_bounds = array<i64: 1, 1>}]} {
    %c0_i32 = arith.constant 0 : i32
    %0 = arith.cmpi eq, %arg0, %c0_i32 : i32
    %1 = arith.extui %0 : i1 to i32
    %c0_i32_0 = arith.constant 0 : i32
    %2 = arith.cmpi ne, %1, %c0_i32_0 : i32
    scf.if %2 {
      %c0_14 = arith.constant 0 : index
      %c0_15 = arith.constant 0 : index
      %43 = vector.load %arg1[%c0_14, %c0_15] : memref<1x128xf32, #tpu.memory_space<vmem>>, vector<1x128xf32>
      %c0_16 = arith.constant 0 : index
      %c0_17 = arith.constant 0 : index
      %44 = vector.load %arg4[%c0_16, %c0_17] : memref<1x128xf32, #tpu.memory_space<vmem>>, vector<1x128xf32>
      %45 = tpu.iota {dimensions = array<i32: 1>} : vector<1x128xi32>
      %c8_i32 = arith.constant 8 : i32
      %46 = vector.broadcast %c8_i32 : i32 to vector<1x128xi32>
      %47 = arith.cmpi slt, %45, %46 : vector<1x128xi32>
      %48 = arith.extui %47 : vector<1x128xi1> to vector<1x128xi32>
      %49 = arith.sitofp %48 : vector<1x128xi32> to vector<1x128xf32>
      %cst_18 = arith.constant 5.000000e-01 : f32
      %50 = vector.broadcast %cst_18 : f32 to vector<1x128xf32>
      %51 = arith.cmpf ogt, %49, %50 : vector<1x128xf32>
      %cst_19 = arith.constant 0xFF800000 : f32
      %52 = vector.broadcast %cst_19 : f32 to vector<1x128xf32>
      %53 = arith.select %51, %43, %52 : vector<1x128xi1>, vector<1x128xf32>
      %54 = vector.shape_cast %53 : vector<1x128xf32> to vector<1x1x128xf32>
      %cst_20 = arith.constant dense<0xFF800000> : vector<1xf32>
      %55 = vector.multi_reduction <maximumf>, %54, %cst_20 [1, 2] : vector<1x1x128xf32> to vector<1xf32>
      %56 = vector.shape_cast %55 : vector<1xf32> to vector<1x1x1xf32>
      %57 = vector.extract %56[0, 0, 0] : f32 from vector<1x1x1xf32>
      %58 = vector.broadcast %57 : f32 to vector<1x128xf32>
      %59 = arith.subf %43, %58 : vector<1x128xf32>
      %60 = math.exp %59 : vector<1x128xf32>
      %61 = arith.mulf %60, %49 : vector<1x128xf32>
      %cst_21 = arith.constant 0.000000e+00 : f32
      %62 = vector.broadcast %cst_21 : f32 to vector<8x128xf32>
      %c0_22 = arith.constant 0 : index
      %c0_23 = arith.constant 0 : index
      %63 = vector.load %arg8[%c0_22, %c0_23] : memref<8x128xf32, #tpu.memory_space<vmem>>, vector<8x128xf32>
      tpu.vector_store %arg8[%c0_22, %c0_23], %62 {strides = array<i32>} : memref<8x128xf32, #tpu.memory_space<vmem>>, vector<8x128xf32>,
      %c0_24 = arith.constant 0 : index
      %c0_25 = arith.constant 0 : index
      %64 = vector.load %arg8[%c0_24, %c0_25] : memref<8x128xf32, #tpu.memory_space<vmem>>, vector<1x128xf32>
      tpu.vector_store %arg8[%c0_24, %c0_25], %61 {strides = array<i32>} : memref<8x128xf32, #tpu.memory_space<vmem>>, vector<1x128xf32>,
      %c1 = arith.constant 1 : index
      %c0_26 = arith.constant 0 : index
      %65 = vector.load %arg8[%c1, %c0_26] : memref<8x128xf32, #tpu.memory_space<vmem>>, vector<1x128xf32>
      tpu.vector_store %arg8[%c1, %c0_26], %49 {strides = array<i32>} : memref<8x128xf32, #tpu.memory_space<vmem>>, vector<1x128xf32>,
      %c0_27 = arith.constant 0 : index
      %66 = memref.load %arg9[%c0_27] : memref<4xf32, #tpu.memory_space<smem>>
      memref.store %57, %arg9[%c0_27] : memref<4xf32, #tpu.memory_space<smem>>
      %67 = arith.mulf %44, %49 : vector<1x128xf32>
      %68 = vector.shape_cast %67 : vector<1x128xf32> to vector<1x1x128xf32>
      %cst_28 = arith.constant dense<0.000000e+00> : vector<1xf32>
      %69 = vector.multi_reduction <add>, %68, %cst_28 [1, 2] : vector<1x1x128xf32> to vector<1xf32>
      %70 = vector.shape_cast %69 : vector<1xf32> to vector<1x1x1xf32>
      %71 = vector.extract %70[0, 0, 0] : f32 from vector<1x1x1xf32>
      %c1_29 = arith.constant 1 : index
      %72 = memref.load %arg9[%c1_29] : memref<4xf32, #tpu.memory_space<smem>>
      memref.store %71, %arg9[%c1_29] : memref<4xf32, #tpu.memory_space<smem>>
      %cst_30 = arith.constant 0.000000e+00 : f32
      %c2_31 = arith.constant 2 : index
      %73 = memref.load %arg9[%c2_31] : memref<4xf32, #tpu.memory_space<smem>>
      memref.store %cst_30, %arg9[%c2_31] : memref<4xf32, #tpu.memory_space<smem>>
      %c0_32 = arith.constant 0 : index
      %c0_33 = arith.constant 0 : index
      %74 = vector.load %arg5[%c0_32, %c0_33] : memref<32x16xf32, #tpu.memory_space<vmem>>, vector<32x16xf32>
      %75 = arith.mulf %74, %74 : vector<32x16xf32>
      %76 = vector.shape_cast %75 : vector<32x16xf32> to vector<1x32x16xf32>
      %cst_34 = arith.constant dense<0.000000e+00> : vector<1xf32>
      %77 = vector.multi_reduction <add>, %76, %cst_34 [1, 2] : vector<1x32x16xf32> to vector<1xf32>
      %78 = vector.shape_cast %77 : vector<1xf32> to vector<1x1x1xf32>
      %79 = vector.extract %78[0, 0, 0] : f32 from vector<1x1x1xf32>
      %80 = math.sqrt %79 : f32
      %cst_35 = arith.constant 0.000000e+00 : f32
      %81 = arith.addf %cst_35, %80 : f32
      %c0_36 = arith.constant 0 : index
      %c0_37 = arith.constant 0 : index
      %82 = vector.load %arg6[%c0_36, %c0_37] : memref<1x32xf32, #tpu.memory_space<vmem>>, vector<1x32xf32>
      %83 = arith.mulf %82, %82 : vector<1x32xf32>
      %84 = vector.shape_cast %83 : vector<1x32xf32> to vector<1x1x32xf32>
      %cst_38 = arith.constant dense<0.000000e+00> : vector<1xf32>
      %85 = vector.multi_reduction <add>, %84, %cst_38 [1, 2] : vector<1x1x32xf32> to vector<1xf32>
      %86 = vector.shape_cast %85 : vector<1xf32> to vector<1x1x1xf32>
      %87 = vector.extract %86[0, 0, 0] : f32 from vector<1x1x1xf32>
      %88 = math.sqrt %87 : f32
      %89 = arith.addf %81, %88 : f32
      %c3 = arith.constant 3 : index
      %90 = memref.load %arg9[%c3] : memref<4xf32, #tpu.memory_space<smem>>
      memref.store %89, %arg9[%c3] : memref<4xf32, #tpu.memory_space<smem>>
    } else {
    }
    %c128_i32 = arith.constant 128 : i32
    %3 = arith.muli %arg0, %c128_i32 : i32
    %4 = tpu.assume_multiple %3, 128 : i32
    %c0 = arith.constant 0 : index
    %5 = arith.index_cast %4 : i32 to index
    %6 = vector.load %arg1[%c0, %5] : memref<1x128xf32, #tpu.memory_space<vmem>>, vector<1x128xf32>
    %c0_1 = arith.constant 0 : index
    %7 = arith.index_cast %4 : i32 to index
    %8 = vector.load %arg2[%c0_1, %7] : memref<1x128xf32, #tpu.memory_space<vmem>>, vector<1x128xf32>
    %c0_2 = arith.constant 0 : index
    %9 = arith.index_cast %4 : i32 to index
    %10 = vector.load %arg4[%c0_2, %9] : memref<1x128xf32, #tpu.memory_space<vmem>>, vector<1x128xf32>
    %c0_3 = arith.constant 0 : index
    %c0_4 = arith.constant 0 : index
    %11 = vector.load %arg3[%c0_3, %c0_4] : memref<128x1xf32, #tpu.memory_space<vmem>>, vector<128x1xf32>
    %12 = vector.broadcast %11 : vector<128x1xf32> to vector<128x128xf32>
    %13 = vector.broadcast %8 : vector<1x128xf32> to vector<128x128xf32>
    %14 = arith.cmpf oge, %12, %13 : vector<128x128xf32>
    %15 = arith.extui %14 : vector<128x128xi1> to vector<128x128xi32>
    %16 = arith.sitofp %15 : vector<128x128xi32> to vector<128x128xf32>
    %c0_5 = arith.constant 0 : index
    %c0_6 = arith.constant 0 : index
    %17 = vector.load %arg8[%c0_5, %c0_6] : memref<8x128xf32, #tpu.memory_space<vmem>>, vector<8x128xf32>
    %cst = arith.constant dense<0.000000e+00> : vector<8x128xf32>
    %18 = tpu.matmul %17, %16, %cst {dimension_numbers = #tpu.dot_dimension_numbers<[1], [0], [0], [1], [0, 0, 1, 1], [], []>} : vector<8x128xf32>, vector<128x128xf32>, vector<8x128xf32> -> vector<8x128xf32>
    %19 = vector.extract_strided_slice %18 {offsets = [0, 0], sizes = [1, 128], strides = [1, 1]} : vector<8x128xf32> to vector<1x128xf32>
    %20 = vector.extract_strided_slice %18 {offsets = [1, 0], sizes = [1, 128], strides = [1, 1]} : vector<8x128xf32> to vector<1x128xf32>
    %c0_7 = arith.constant 0 : index
    %21 = memref.load %arg9[%c0_7] : memref<4xf32, #tpu.memory_space<smem>>
    %22 = math.log %19 : vector<1x128xf32>
    %23 = vector.broadcast %21 : f32 to vector<1x128xf32>
    %24 = arith.addf %23, %22 : vector<1x128xf32>
    %25 = math.log %20 : vector<1x128xf32>
    %26 = arith.subf %24, %25 : vector<1x128xf32>
    %cst_8 = arith.constant 0.000000e+00 : f32
    %27 = vector.broadcast %cst_8 : f32 to vector<1x128xf32>
    %28 = arith.cmpf ogt, %10, %27 : vector<1x128xf32>
    %29 = arith.subf %6, %26 : vector<1x128xf32>
    %30 = arith.mulf %29, %10 : vector<1x128xf32>
    %cst_9 = arith.constant 0.000000e+00 : f32
    %31 = vector.broadcast %cst_9 : f32 to vector<1x128xf32>
    %32 = arith.select %28, %30, %31 : vector<1x128xi1>, vector<1x128xf32>
    %c2 = arith.constant 2 : index
    %33 = memref.load %arg9[%c2] : memref<4xf32, #tpu.memory_space<smem>>
    %34 = vector.shape_cast %32 : vector<1x128xf32> to vector<1x1x128xf32>
    %cst_10 = arith.constant dense<0.000000e+00> : vector<1xf32>
    %35 = vector.multi_reduction <add>, %34, %cst_10 [1, 2] : vector<1x1x128xf32> to vector<1xf32>
    %36 = vector.shape_cast %35 : vector<1xf32> to vector<1x1x1xf32>
    %37 = vector.extract %36[0, 0, 0] : f32 from vector<1x1x1xf32>
    %38 = arith.addf %33, %37 : f32
    %c2_11 = arith.constant 2 : index
    %39 = memref.load %arg9[%c2_11] : memref<4xf32, #tpu.memory_space<smem>>
    memref.store %38, %arg9[%c2_11] : memref<4xf32, #tpu.memory_space<smem>>
    %c0_i32_12 = arith.constant 0 : i32
    %40 = arith.cmpi eq, %arg0, %c0_i32_12 : i32
    %41 = arith.extui %40 : i1 to i32
    %c0_i32_13 = arith.constant 0 : i32
    %42 = arith.cmpi ne, %41, %c0_i32_13 : i32
    scf.if %42 {
      %c2_14 = arith.constant 2 : index
      %43 = memref.load %arg9[%c2_14] : memref<4xf32, #tpu.memory_space<smem>>
      %c1 = arith.constant 1 : index
      %44 = memref.load %arg9[%c1] : memref<4xf32, #tpu.memory_space<smem>>
      %45 = arith.divf %43, %44 : f32
      %cst_15 = arith.constant 0.000000e+00 : f32
      %46 = arith.subf %cst_15, %45 : f32
      %c3 = arith.constant 3 : index
      %47 = memref.load %arg9[%c3] : memref<4xf32, #tpu.memory_space<smem>>
      %cst_16 = arith.constant 0.00999999977 : f32
      %48 = arith.mulf %cst_16, %47 : f32
      %49 = arith.addf %46, %48 : f32
      %c0_17 = arith.constant 0 : index
      %c0_18 = arith.constant 0 : index
      %50 = memref.load %arg7[%c0_17, %c0_18] : memref<1x1xf32, #tpu.memory_space<smem>>
      memref.store %49, %arg7[%c0_17, %c0_18] : memref<1x1xf32, #tpu.memory_space<smem>>
    } else {
    }
    return
  }
  func.func @transform_0(%arg0: i32) -> (i32, i32) {
    %c0_i32 = arith.constant 0 : i32
    %c0_i32_0 = arith.constant 0 : i32
    %c0_i32_1 = arith.constant 0 : i32
    return %c0_i32, %c0_i32_0 : i32, i32
  }
  func.func @transform_1(%arg0: i32) -> (i32, i32) {
    %c0_i32 = arith.constant 0 : i32
    %c0_i32_0 = arith.constant 0 : i32
    %c0_i32_1 = arith.constant 0 : i32
    return %c0_i32, %c0_i32_0 : i32, i32
  }
  func.func @transform_2(%arg0: i32) -> (i32, i32) {
    %c0_i32 = arith.constant 0 : i32
    %c0_i32_0 = arith.constant 0 : i32
    %c0_i32_1 = arith.constant 0 : i32
    return %c0_i32, %c0_i32_0 : i32, i32
  }
  func.func @transform_3(%arg0: i32) -> (i32, i32) {
    %c0_i32 = arith.constant 0 : i32
    %c0_i32_0 = arith.constant 0 : i32
    %c0_i32_1 = arith.constant 0 : i32
    return %c0_i32, %c0_i32_0 : i32, i32
  }
  func.func @transform_4(%arg0: i32) -> (i32, i32) {
    %c0_i32 = arith.constant 0 : i32
    %c0_i32_0 = arith.constant 0 : i32
    %c0_i32_1 = arith.constant 0 : i32
    return %c0_i32, %c0_i32_0 : i32, i32
  }
  func.func @transform_5(%arg0: i32) -> (i32, i32) {
    %c0_i32 = arith.constant 0 : i32
    %c0_i32_0 = arith.constant 0 : i32
    %c0_i32_1 = arith.constant 0 : i32
    return %c0_i32, %c0_i32_0 : i32, i32
  }
  func.func @transform_6(%arg0: i32) -> (i32, i32) {
    %c0_i32 = arith.constant 0 : i32
    %c0_i32_0 = arith.constant 0 : i32
    %c0_i32_1 = arith.constant 0 : i32
    return %c0_i32, %c0_i32_0 : i32, i32
  }
}

</mosaic_0001>

<bundles_post_ra>
// kernel: tpu_custom_call.1
= control target key start
LH: loop header
LB: loop body
LE: loop exit
PB: predicated region body
PF: predicated region fallthrough
CT: control target
= control target key end

     0   :  { %v30_v1 = vlaneseq  ;;  %v479_v2 = vmov 0   ;;  %v480_v3 = vmov 0.0   ;;  %s621_s0 = inlined_call_operand.vmem [shape: f32[1,128], index: 0, kind: input, shape index: {}]   ;;  %s622_s1 = inlined_call_operand.vmem [shape: f32[1,128], index: 1, kind: input, shape index: {}]   ;;  %s623_s2 = inlined_call_operand.vmem [shape: f32[128,1], index: 2, kind: input, shape index: {}]   ;;  %s624_s3 = inlined_call_operand.vmem [shape: f32[1,128], index: 3, kind: input, shape index: {}]   ;;  %s625_s4 = inlined_call_operand.vmem [shape: f32[32,16], index: 4, kind: input, shape index: {}]   ;;  %s626_s5 = inlined_call_operand.vmem [shape: f32[1,32], index: 5, kind: input, shape index: {}]   ;;  %s627_s6 = inlined_call_operand.hbm [shape: f32[1,1], index: 6, kind: output, shape index: {}]  }
   0x1   :  { %v166_v0 = vld [vmem:[%s623_s2 + $0x70] sm:$0xff]  ;;  %452 = vset.pattern.permute.xlu1 %v479_v2  ;;  %53 = vst [vmem:[#allocation2] sm:$0xff] %v480_v3  ;;  %453 = vset.pattern.permute.xlu2 %v479_v2  ;;  %v164_v4 = vld [vmem:[%s623_s2 + $0x60] sm:$0xff] }
   0x2   :  { %240 = vperm.xlu1 %452, %v166_v0   ;;  %v31_v5 = vand.u32 127, %v30_v1  ;;  %230 = vperm.xlu2 %453, %v164_v4   ;;  %v527_v6 = vld [vmem:[%s621_s0] sm:$0x1] }
   0x3   :  { %451 = vset.pattern.permute.xlu0 %v479_v2 }
   0x4   :  { %vm32_vm0 = vcmp.lt.s32.totalorder %v31_v5, 8 }
   0x5   :  { %11 = vsyncpa [#allocation5], 0  ;;  %v529_v7 = vsel %vm32_vm0, 1.0, %v480_v3  ;;  %vm37_vm1 = vcmask 1040384   ;;  %v165_v9 = vld [vmem:[%s623_s2 + $0x68] sm:$0xff]  ;;  %v163_v10 = vld [vmem:[%s623_s2 + $0x58] sm:$0xff] }
   0x6   :  { %vm35_vm2 = vcmp.gt.f32.partialorder %v529_v7, 0.5  ;;  %55 = vst [vmem:[#allocation2 + $0x1] sm:$0x1] %v529_v7  ;;  %v162_v12 = vld [vmem:[%s623_s2 + $0x50] sm:$0xff]  ;;  %v161_v13 = vld [vmem:[%s623_s2 + $0x48] sm:$0xff]  ;;  %v160_v14 = vld [vmem:[%s623_s2 + $0x40] sm:$0xff] }
   0x7   :  { %v36_v8 = vsel %vm35_vm2, %v527_v6, -inf  ;;  %v159_v15 = vld [vmem:[%s623_s2 + $0x38] sm:$0xff]  ;;  %v158_v17 = vld [vmem:[%s623_s2 + $0x30] sm:$0xff]  ;;  %v157_v18 = vld [vmem:[%s623_s2 + $0x28] sm:$0xff]  ;;  %vm81_vm3 = vcmask 130048   ;;  %vm115_vm4 = vcmask 253952  }
   0x8   :  { %v38_v11 = vsel %vm37_vm1, %v36_v8, -inf  ;;  %v167_v16 = vld [vmem:[%s623_s2 + $0x78] sm:$0xff]  ;;  %v154_v19 = vld [vmem:[%s623_s2 + $0x10] sm:$0xff]  ;;  %v156_v20 = vld [vmem:[%s623_s2 + $0x20] sm:$0xff]  ;;  %v481_v61 = vmov 1.0   ;;  %s381_s7 = sshll.u32 %s627_s6, 4  ;;  %s382_s7 = int_to_ptr.hbm [resolvable:$true] %s381_s7 }
   0x9   :  { %39 = vmax.xlane.f32.xlu0 %v38_v11  ;;  %v155_v21 = vld [vmem:[%s623_s2 + $0x18] sm:$0xff]  ;;  %v153_v22 = vld [vmem:[%s623_s2 + $0x8] sm:$0xff]  ;;  %v152_v23 = vld [vmem:[%s623_s2] sm:$0xff]  ;;  %s482_s11 = smov [#allocation4]  }
   0xa   :  { %235 = vperm.xlu1 %452, %v165_v9   ;;  %225 = vperm.xlu2 %453, %v163_v10   ;;  %v29_v24 = vld [vmem:[%s624_s3] sm:$0x1]  ;;  %v74_v26 = vld [vmem:[%s625_s4 + $0x8] sm:$0xff]  ;;  %v75_v30 = vld [vmem:[%s625_s4 + $0x10] sm:$0xff] }
   0xb   :  { %v73_v25 = vld [vmem:[%s625_s4] sm:$0xff]  ;;  %v58_v27 = vmul.f32 %v529_v7, %v29_v24  ;;  %v78_v29 = vmul.f32 %v74_v26, %v74_v26  ;;  %v79_v32 = vmul.f32 %v75_v30, %v75_v30  ;;  %v76_v35 = vld [vmem:[%s625_s4 + $0x18] sm:$0xff] }
   0xc   :  { %v77_v28 = vmul.f32 %v73_v25, %v73_v25  ;;  %v80_v37 = vmul.f32 %v76_v35, %v76_v35  ;;  %v454_v55 = vld [vmem:[%s622_s1] ss:$0 sm:$0xff] }
   0xd   :  { %v59_v31 = vsel %vm37_vm1, %v58_v27, 0.0  ;;  %v83_v34 = vsel %vm81_vm3, %v78_v29, 0.0  ;;  %v85_v38 = vsel %vm81_vm3, %v79_v32, 0.0  ;;  %v113_v59 = vld [vmem:[%s626_s5] sm:$0x1] }
   0xe   :  { %v82_v33 = vsel %vm81_vm3, %v77_v28, 0.0  ;;  %v87_v40 = vsel %vm81_vm3, %v80_v37, 0.0  ;;  %v114_v60 = vmul.f32 %v113_v59, %v113_v59 }
   0xf   :  { %v84_v36 = vadd.f32 %v83_v34, %v82_v33 }
  0x10   :  { %v116_v62 = vsel %vm115_vm4, %v114_v60, 0.0 }
  0x11   :  { %v86_v39 = vadd.f32 %v85_v38, %v84_v36 }
  0x12   :  { %220 = vperm.xlu1 %452, %v162_v12   ;;  %215 = vperm.xlu2 %453, %v161_v13  }
  0x13   :  { %v88_v41 = vadd.f32 %v87_v40, %v86_v39 }
  0x1a   :  { %210 = vperm.xlu1 %452, %v160_v14   ;;  %205 = vperm.xlu2 %453, %v159_v15  }
  0x1d   :  { %245 = vperm.xlu0 %451, %v167_v16  }
  0x22   :  { %200 = vperm.xlu1 %452, %v158_v17   ;;  %195 = vperm.xlu2 %453, %v157_v18  }
  0x25   :  { %180 = vperm.xlu0 %451, %v154_v19  }
  0x2a   :  { %190 = vperm.xlu1 %452, %v156_v20   ;;  %185 = vperm.xlu2 %453, %v155_v21  }
  0x32   :  { %175 = vperm.xlu1 %452, %v153_v22   ;;  %170 = vperm.xlu2 %453, %v152_v23  }
  0x4f   :  { %60 = vadd.xlane.f32.xlu0 %v59_v31 }
  0x5b   :  { %117 = vadd.xlane.f32.xlu2 %v116_v62 }
  0x5c   :  { %89 = vadd.xlane.f32.xlu1 %v88_v41  ;;  %v231_v42 = vpop.permute.xlu2 %230 }
  0x5d   :  { %vm263_vm8 = vcmp.ge.f32.partialorder %v231_v42, %v454_v55 }
  0x64   :  { %v226_v44 = vpop.permute.xlu2 %225 }
  0x65   :  { %vm262_vm9 = vcmp.ge.f32.partialorder %v226_v44, %v454_v55 }
  0x6c   :  { %v216_v50 = vpop.permute.xlu2 %215 }
  0x6d   :  { %vm260_vm11 = vcmp.ge.f32.partialorder %v216_v50, %v454_v55  ;;  %v147_v50 = vld [vmem:[%s621_s0] sm:$0x1] }
  0x74   :  { %v241_v43 = vpop.permute.xlu1 %240  ;;  %v206_v57 = vpop.permute.xlu2 %205 }
  0x75   :  { %vm265_vm5 = vcmp.ge.f32.partialorder %v241_v43, %v454_v55  ;;  %vm258_vm13 = vcmp.ge.f32.partialorder %v206_v57, %v454_v55 }
  0x7c   :  { %v236_v45 = vpop.permute.xlu1 %235  ;;  %v40_v46 = vpop.xlane.xlu0 %39 }
  0x7d   :  { %v41_v47 = vrot.slane %v40_v46, 4  ;;  %vm264_vm7 = vcmp.ge.f32.partialorder %v236_v45, %v454_v55  ;;  %v196_v0 = vpop.permute.xlu2 %195 }
  0x7e   :  { %vm256_vm15 = vcmp.ge.f32.partialorder %v196_v0, %v454_v55 }
  0x7f   :  { %v42_v48 = vmax.f32 %v40_v46, %v41_v47 }
  0x81   :  { %v43_v49 = vrot.slane %v42_v48, 2 }
  0x83   :  { %v44_v51 = vmax.f32 %v42_v48, %v43_v49 }
  0x84   :  { %v221_v52 = vpop.permute.xlu1 %220 }
  0x85   :  { %v45_v53 = vrot.slane %v44_v51, 1  ;;  %vm261_vm10 = vcmp.ge.f32.partialorder %v221_v52, %v454_v55  ;;  %v186_v2 = vpop.permute.xlu2 %185  ;;  %v151_v52 = vld [vmem:[%s624_s3] sm:$0x1] }
  0x86   :  { %vm254_vm2 = vcmp.ge.f32.partialorder %v186_v2, %v454_v55 }
  0x87   :  { %v46_v54 = vmax.f32 %v44_v51, %v45_v53 }
  0x89   :  { %431 = vpush %v46_v54 }
  0x8c   :  { %v211_v56 = vpop.permute.xlu1 %210 }
  0x8d   :  { %vm259_vm12 = vcmp.ge.f32.partialorder %v211_v56, %v454_v55  ;;  %v171_v5 = vpop.permute.xlu2 %170 }
  0x8f   :  { %v246_v58 = vpop.permute.xlu0 %245 }
  0x90   :  { %vm266_vm6 = vcmp.ge.f32.partialorder %v246_v58, %v454_v55 }
  0x91   :  { %411 = vmatpush.msk.msra.mxu0 %vm266_vm6, %v481_v61 }
  0x93   :  { %412 = vmatpush.msk.msra.mxu0 %vm265_vm5, %v481_v61  ;;  %vm251_vm5 = vcmp.ge.f32.partialorder %v171_v5, %v454_v55 }
  0x94   :  { %v201_v63 = vpop.permute.xlu1 %200 }
  0x95   :  { %413 = vmatpush.msk.msra.mxu0 %vm264_vm7, %v481_v61  ;;  %vm257_vm14 = vcmp.ge.f32.partialorder %v201_v63, %v454_v55 }
  0x97   :  { %414 = vmatpush.msk.msra.mxu0 %vm263_vm8, %v481_v61  ;;  %v181_v3 = vpop.permute.xlu0 %180  ;;  %vm329_vm8 = vcmp.gt.f32.partialorder %v151_v52, 0.0 }
  0x98   :  { %vm253_vm3 = vcmp.ge.f32.partialorder %v181_v3, %v454_v55 }
  0x99   :  { %415 = vmatpush.msk.msra.mxu0 %vm262_vm9, %v481_v61 }
  0x9b   :  { %416 = vmatpush.msk.msra.mxu0 %vm261_vm10, %v481_v61 }
  0x9c   :  { %v191_v1 = vpop.permute.xlu1 %190 }
  0x9d   :  { %417 = vmatpush.msk.msra.mxu0 %vm260_vm11, %v481_v61  ;;  %vm255_vm0 = vcmp.ge.f32.partialorder %v191_v1, %v454_v55 }
  0x9f   :  { %418 = vmatpush.msk.msra.mxu0 %vm259_vm12, %v481_v61 }
  0xa1   :  { %419 = vmatpush.msk.msra.mxu0 %vm258_vm13, %v481_v61 }
  0xa3   :  { %420 = vmatpush.msk.msra.mxu0 %vm257_vm14, %v481_v61 }
  0xa4   :  { %v176_v4 = vpop.permute.xlu1 %175 }
  0xa5   :  { %421 = vmatpush.msk.msra.mxu0 %vm256_vm15, %v481_v61  ;;  %vm252_vm4 = vcmp.ge.f32.partialorder %v176_v4, %v454_v55 }
  0xa7   :  { %422 = vmatpush.msk.msra.mxu0 %vm255_vm0, %v481_v61 }
  0xa9   :  { %423 = vmatpush.msk.msra.mxu0 %vm254_vm2, %v481_v61 }
  0xab   :  { %424 = vmatpush.msk.msra.mxu0 %vm253_vm3, %v481_v61 }
  0xad   :  { %425 = vmatpush.msk.msra.mxu0 %vm252_vm4, %v481_v61 }
  0xaf   :  { %426 = vmatpush.msk.msra.mxu0 %vm251_vm5, %v481_v61 }
  0xba   :  { %s600_s1 = spop %431 }
  0xbb   :  { %v48_v8 = vstv %s600_s1 }
  0xbc   :  { %v49_v9 = vsub.f32 %v527_v6, %v48_v8 }
  0xbe   :  { %v50_v10 = vmul.f32 1.442695, %v49_v9 }
  0xc0   :  { %455 = vpow2.f32 %v50_v10 }
  0xc2   :  { %v61_v11 = vpop.xlane.xlu0 %60 }
  0xc3   :  { %v62_v12 = vrot.slane %v61_v11, 4 }
  0xc5   :  { %v63_v13 = vadd.f32 %v62_v12, %v61_v11 }
  0xc6   :  { %v456_v14 = vpop.eup %455 }
  0xc7   :  { %v52_v15 = vmul.f32 %v456_v14, %v529_v7  ;;  %v64_v16 = vrot.slane %v63_v13, 2 }
  0xc9   :  { %54 = vst [vmem:[#allocation2] sm:$0x1] %v52_v15  ;;  %v65_v17 = vadd.f32 %v64_v16, %v63_v13 }
  0xcb   :  { %v66_v18 = vrot.slane %v65_v17, 1 }
  0xcd   :  { %v67_v19 = vadd.f32 %v66_v18, %v65_v17 }
  0xce   :  { %v118_v27 = vpop.xlane.xlu2 %117 }
  0xcf   :  { %v90_v20 = vpop.xlane.xlu1 %89  ;;  %433 = vpush %v67_v19  ;;  %v119_v7 = vrot.slane %v118_v27, 4 }
  0xd0   :  { %v299_v21 = vld [vmem:[#allocation2] sm:$0xff]  ;;  %v91_v22 = vrot.slane %v90_v20, 4 }
  0xd1   :  { %316 = vmatmul.f32.vlgmr.msra.gmra.mxu0 %v299_v21  ;;  %v120_v29 = vadd.f32 %v119_v7, %v118_v27 }
  0xd2   :  { %v92_v23 = vadd.f32 %v91_v22, %v90_v20 }
  0xd3   :  { %v121_v31 = vrot.slane %v120_v29, 2 }
  0xd4   :  { %v93_v6 = vrot.slane %v92_v23, 2 }
  0xd5   :  { %v122_v34 = vadd.f32 %v121_v31, %v120_v29 }
  0xd6   :  { %v94_v24 = vadd.f32 %v93_v6, %v92_v23 }
  0xd7   :  { %v123_v37 = vrot.slane %v122_v34, 1 }
  0xd8   :  { %v95_v25 = vrot.slane %v94_v24, 1 }
  0xd9   :  { %v124_v41 = vadd.f32 %v123_v37, %v122_v34 }
  0xda   :  { %v96_v26 = vadd.f32 %v95_v25, %v94_v24 }
  0xdc   :  { %435 = vpush %v96_v26 }
 0x100   :  { %s605_s5 = spop %433 }
 0x101   :  { %v353_v3 = vstv %s605_s5 }
 0x102   :  { %v365_v14 = vand.u32 2147483648, %v353_v3  ;;  %v363_v16 = vand.u32 2147483647, %v353_v3 }
 0x104   :  { %v366_v19 = vor.u32 1.1754944e-38, %v365_v14  ;;  %vm364_vm13 = vcmp.eq.f32.partialorder %v363_v16, 8.507059e+37 }
 0x10d   :  { %s436_s19 = spop %435 }
 0x10e   :  { %v98_v28 = vstv %s436_s19 }
 0x10f   :  { %457 = vrsqrt.f32 %v98_v28  ;;  %vm106_vm6 = vcmp.eq.f32.partialorder %v98_v28, inf  ;;  %v109_v39 = vand.u32 2147483648, %v98_v28  ;;  %vm108_vm7 = vcmp.eq.f32.partialorder %v98_v28, 0.0 }
 0x115   :  { %v458_v30 = vpop.eup %457 }
 0x116   :  { %v100_v32 = vmul.f32 %v458_v30, %v98_v28 }
 0x118   :  { %v101_v33 = vmul.f32 %v458_v30, %v100_v32 }
 0x11a   :  { %v102_v35 = vmul.f32 0.5, %v101_v33 }
 0x11c   :  { %v103_v36 = vsub.f32 1.5, %v102_v35 }
 0x11e   :  { %v104_v38 = vmul.f32 %v458_v30, %v103_v36 }
 0x120   :  { %v105_v40 = vmul.f32 %v104_v38, %v98_v28 }
 0x122   :  { %v107_v42 = vsel %vm106_vm6, %v98_v28, %v105_v40 }
 0x123   :  { %v110_v43 = vsel %vm108_vm7, %v109_v39, %v107_v42 }
 0x124   :  { %437 = vpush %v110_v43 }
 0x125   :  { %439 = vpush %v124_v41 }
 0x14e   :  { %v317_v44 = vpop.f32.mrf.mxu0 }
 0x14f   :  { %459 = vlog2.f32 %v317_v44 }
 0x155   :  { %v460_v45 = vpop.eup %459  ;;  %s607_s20 = spop %437 }
 0x156   :  { %v322_v46 = vmul.f32 0.6931472, %v460_v45  ;;  %s440_s21 = spop %439 }
 0x157   :  { %v126_v47 = vstv %s440_s21 }
 0x158   :  { %v324_v48 = vadd.f32 %v322_v46, %v48_v8  ;;  %v326_v49 = vrot.slane %v322_v46, 1  ;;  %461 = vrsqrt.f32 %v126_v47  ;;  %vm134_vm9 = vcmp.eq.f32.partialorder %v126_v47, inf }
 0x159   :  { %v137_v63 = vand.u32 2147483648, %v126_v47  ;;  %vm136_vm10 = vcmp.eq.f32.partialorder %v126_v47, 0.0  ;;  %463 = vrcp.f32 %v353_v3 }
 0x15a   :  { %v328_v51 = vsub.f32 %v324_v48, %v326_v49 }
 0x15c   :  { %v330_v53 = vsub.f32 %v147_v50, %v328_v51 }
 0x15e   :  { %v462_v54 = vpop.eup %461  ;;  %v331_v55 = vmul.f32 %v330_v53, %v151_v52 }
 0x15f   :  { %v128_v56 = vmul.f32 %v462_v54, %v126_v47  ;;  %v464_v4 = vpop.eup %463 }
 0x160   :  { %v332_v57 = vsel %vm329_vm8, %v331_v55, 0.0  ;;  %v355_v5 = vmul.f32 %v464_v4, %v353_v3  ;;  %vm360_vm11 = vweird.f32 %v464_v4 }
 0x161   :  { %v335_v58 = vsel %vm37_vm1, %v332_v57, 0.0  ;;  %v129_v59 = vmul.f32 %v462_v54, %v128_v56  ;;  %vm359_vm1 = vweird.f32 %v353_v3 }
 0x162   :  { %336 = vadd.xlane.f32.xlu2 %v335_v58  ;;  %v356_v8 = vsub.f32 1.0, %v355_v5  ;;  %vm361_vm12 = vmor %vm359_vm1, %vm360_vm11 }
 0x163   :  { %v130_v60 = vmul.f32 0.5, %v129_v59 }
 0x164   :  { %v357_v11 = vmul.f32 %v464_v4, %v356_v8 }
 0x165   :  { %v131_v61 = vsub.f32 1.5, %v130_v60 }
 0x166   :  { %v358_v15 = vadd.f32 %v464_v4, %v357_v11 }
 0x167   :  { %v132_v62 = vmul.f32 %v462_v54, %v131_v61 }
 0x168   :  { %v362_v20 = vsel %vm361_vm12, %v464_v4, %v358_v15 }
 0x169   :  { %v133_v0 = vmul.f32 %v132_v62, %v126_v47  ;;  %v367_v22 = vsel %vm364_vm13, %v366_v19, %v362_v20 }
 0x16b   :  { %v135_v1 = vsel %vm134_vm9, %v126_v47, %v133_v0 }
 0x16c   :  { %v138_v2 = vsel %vm136_vm10, %v137_v63, %v135_v1 }
 0x16d   :  { %441 = vpush %v138_v2 }
 0x19e   :  { %s442_s0 = spop %441 }
 0x19f   :  { %s140_s3 = sadd.f32 %s442_s0, %s607_s20 }
 0x1a1   :  { %s372_s8 = smul.f32 0.01, %s140_s3 }
 0x1d5   :  { %v337_v9 = vpop.xlane.xlu2 %336 }
 0x1d6   :  { %v338_v10 = vrot.slane %v337_v9, 4 }
 0x1d8   :  { %v339_v12 = vadd.f32 %v338_v10, %v337_v9 }
 0x1da   :  { %v340_v13 = vrot.slane %v339_v12, 2 }
 0x1dc   :  { %v341_v17 = vadd.f32 %v340_v13, %v339_v12 }
 0x1de   :  { %v342_v18 = vrot.slane %v341_v17, 1 }
 0x1e0   :  { %v343_v21 = vadd.f32 %v342_v18, %v341_v17 }
 0x1e2   :  { %443 = vpush %v343_v21 }
 0x1e3   :  { %445 = vpush %v367_v22 }
 0x213   :  { %s444_s26 = spop %443 }
 0x214   :  { %s446_s27 = spop %445 }
 0x215   :  { %s369_s28 = smul.f32 %s446_s27, %s444_s26 }
 0x217   :  { %s370_s9 = ssub.f32 0.0, %s369_s28 }
 0x219   :  { %s373_s10 = sadd.f32 %s372_s8, %s370_s9 }
 0x21b   :  { %375 = sst [smem:[#allocation4]] %s373_s10 }
 0x21c   :  { %384 = dma.smem_to_hbm %s482_s11, 16, %s382_s7, [#allocation5]  }
 0x21d   :  { %477 = dma.done.wait [#allocation5], 16  }
 0x21e   :  { %478 = vsyncadd [#allocation5], 4294967280 }
 0x21f   :  { %389 = sfence }
 0x220   :  { %390 = vsyncpa [#allocation5], 1 }

</bundles_post_ra>
